<compile_context>
chip_gen: v7x
topology: tpu7x:2x2x1
jax: 0.10.0
libtpu: 0.0.40
codegen_flags: <defaults>
</compile_context>

<pallas_src>
import jax
import jax.numpy as jnp
from jax.experimental import pallas as pl
from jax.experimental.pallas import tpu as pltpu

# ---- config (shapes implied by the PyTorch module __init__) -----------------
VOCAB_SIZE = 32
EMBEDDING_DIM = 128
PAD_IDX = 0
N_FILTERS = 128
FILTER_SIZES = (3, 4, 5)
MAX_FS = max(FILTER_SIZES)
NUM_CLASSES = 2
OUT_PAD = 128            # lane-dense padded width of the FC output
K_DIM = MAX_FS * VOCAB_SIZE   # 160: tap-expanded one-hot width

SEQ_LEN = 16
BATCH = 8


# ---- Pallas kernel -----------------------------------------------------------
def textcnn_kernel(tok_ref, wf_ref, ball_ref, fcw_ref, fcb_ref, out_ref):
    """Fused TextCNN forward (eval mode: dropout == identity).

    tok_ref : [B*S, MAX_FS*V] i32  tok_rep[r, c] = token id at flat position
                                   (r + c//V) mod B*S  (tap index = c // V)
    wf_ref  : [MAX_FS*V, 3F]  f32  embedding-fused conv taps
                                   (rows for taps i >= fs of a group are zero)
    ball_ref: [1, 3F]         f32  conv biases, concatenated
    fcw_ref : [3F, OUT_PAD]   f32  fc weight, zero-padded to 128 lanes
    fcb_ref : [1, OUT_PAD]    f32  fc bias, zero-padded
    out_ref : [B, OUT_PAD]    f32  padded logits (first NUM_CLASSES are real)
    """
    bs = tok_ref.shape[0]                       # B * S
    kdim = tok_ref.shape[1]                     # MAX_FS * V
    f3 = wf_ref.shape[1]                        # 3 * F
    b = out_ref.shape[0]
    s = bs // b

    # Fused embedding gather + all conv filter sizes/taps in ONE MXU matmul.
    # One-hot over the tap-expanded vocab axis: onehot[r, tap*V + v] == 1 iff
    # token(r + tap) == v.  Then onehot @ Wf == sum_tap emb[token(r+tap)] @ W_tap.
    v_iota = jax.lax.broadcasted_iota(jnp.int32, (bs, kdim), 1) % VOCAB_SIZE
    onehot = (tok_ref[...] == v_iota).astype(jnp.float32)          # [BS, 160]

    conv = jnp.dot(onehot, wf_ref[...],
                   preferred_element_type=jnp.float32)             # [BS, 3F]
    conv = jnp.maximum(conv + ball_ref[...], 0.0)                  # bias + ReLU

    # Max-over-time via static slices per filter group (no iota/where masks).
    # Lane slices fall on 0/128/256; invalid (overhang) positions are simply
    # excluded by the sublane slice, so no masking is needed.
    conv3 = conv.reshape(b, s, f3)                                 # [B, S, 3F]
    parts = []
    for j, fs in enumerate(FILTER_SIZES):
        valid = s - fs + 1
        grp = conv3[:, :valid, j * N_FILTERS:(j + 1) * N_FILTERS]
        parts.append(jnp.max(grp, axis=1))                         # [B, F]
    pooled = jnp.concatenate(parts, axis=-1)                       # [B, 3F]

    # Dropout is identity in eval mode.  Final FC, lane-dense 128-wide store.
    out = jnp.dot(pooled, fcw_ref[...],
                  preferred_element_type=jnp.float32) + fcb_ref[...]
    out_ref[...] = out.astype(out_ref.dtype)                       # [B, 128]


# ---- one-time parameter packing ----------------------------------------------
def pack_params(emb_table, conv_ws, conv_bs, fcw, fcb):
    """Fold the embedding table into the conv weights and pad the FC."""
    v, e, f = VOCAB_SIZE, EMBEDDING_DIM, N_FILTERS
    nfs = len(FILTER_SIZES)
    wf = jnp.zeros((MAX_FS * v, nfs * f), jnp.float32)
    for j, fs in enumerate(FILTER_SIZES):
        for i in range(fs):
            # conv_ws[j]: [F, fs, E]  (PyTorch [F, 1, fs, E] without channel)
            blk = emb_table @ conv_ws[j][:, i, :].T                # [V, F]
            wf = wf.at[i * v:(i + 1) * v, j * f:(j + 1) * f].set(blk)
    b_all = jnp.concatenate(conv_bs).reshape(1, nfs * f)
    fcw_pad = jnp.zeros((nfs * f, OUT_PAD), jnp.float32)
    fcw_pad = fcw_pad.at[:, :NUM_CLASSES].set(fcw.T)
    fcb_pad = jnp.zeros((1, OUT_PAD), jnp.float32)
    fcb_pad = fcb_pad.at[:, :NUM_CLASSES].set(fcb)
    return wf, b_all, fcw_pad, fcb_pad


# ---- forward wrapper -----------------------------------------------------------
@jax.jit
def textcnn_forward(text, wf, b_all, fcw_pad, fcb_pad):
    """text: [seq_len, batch] int32 (PyTorch convention)."""
    tokens = text.T.astype(jnp.int32)                      # [B, S]
    b, s = tokens.shape
    bs = b * s
    tok_flat = tokens.reshape(bs)
    # Single vectorized gather builds the tap-expanded token map
    # tok_rep[r, c] = token[(r + c//V) mod BS].  Cross-row / wrap-around reads
    # only feed conv positions dropped by the kernel's static slices.
    taps = jnp.arange(K_DIM, dtype=jnp.int32) // VOCAB_SIZE        # [160]
    rows = jnp.arange(bs, dtype=jnp.int32)[:, None]                # [BS, 1]
    tok_rep = tok_flat[(rows + taps[None, :]) % bs]                # [BS, 160]

    vmem = pl.BlockSpec(memory_space=pltpu.MemorySpace.VMEM)
    out_pad = pl.pallas_call(
        textcnn_kernel,
        out_shape=jax.ShapeDtypeStruct((b, OUT_PAD), jnp.float32),
        in_specs=[vmem] * 5,
        out_specs=vmem,
    )(tok_rep, wf, b_all, fcw_pad, fcb_pad)
    return out_pad[:, :NUM_CLASSES]


# ---- deterministic parameter init (synthetic, no checkpoint) ------------------
def init_params(key):
    ks = list(jax.random.split(key, 2 + 2 * len(FILTER_SIZES) + 2))
    it = iter(ks)
    emb_table = jax.random.normal(next(it), (VOCAB_SIZE, EMBEDDING_DIM),
                                  jnp.float32) * 0.1
    emb_table = emb_table.at[PAD_IDX].set(0.0)             # padding_idx row = 0
    conv_ws, conv_bs = [], []
    for fs in FILTER_SIZES:
        w = jax.random.normal(next(it), (N_FILTERS, fs, EMBEDDING_DIM),
                              jnp.float32) * 0.05
        b = jax.random.normal(next(it), (N_FILTERS,), jnp.float32) * 0.05
        conv_ws.append(w)
        conv_bs.append(b)
    fcw = jax.random.normal(next(it),
                            (NUM_CLASSES, len(FILTER_SIZES) * N_FILTERS),
                            jnp.float32) * 0.05
    fcb = jax.random.normal(next(it), (NUM_CLASSES,), jnp.float32) * 0.05
    return emb_table, conv_ws, conv_bs, fcw, fcb


# ---- pure-JAX reference (mirrors the PyTorch forward, eval mode) --------------
def reference(text, emb_table, conv_ws, conv_bs, fcw, fcb):
    tokens = text.T                                        # [B, S]
    emb = jnp.take(emb_table, tokens, axis=0)              # [B, S, E]
    pooled = []
    for W, b in zip(conv_ws, conv_bs):                     # W: [F, fs, E]
        fs = W.shape[1]
        L = emb.shape[1] - fs + 1
        windows = jnp.stack([emb[:, i:i + L, :] for i in range(fs)], axis=2)
        conv = jnp.einsum('blie,fie->blf', windows, W) + b[None, None, :]
        conv = jnp.maximum(conv, 0.0)
        pooled.append(jnp.max(conv, axis=1))
    cat = jnp.concatenate(pooled, axis=-1)                 # dropout = identity
    return cat @ fcw.T + fcb[None, :]


if __name__ == "__main__":
    key = jax.random.PRNGKey(0)
    pkey, tkey = jax.random.split(key)
    emb_table, conv_ws, conv_bs, fcw, fcb = init_params(pkey)

    # `text` in PyTorch convention: [seq_len, batch] of token ids.
    text = jax.random.randint(tkey, (SEQ_LEN, BATCH), 0, VOCAB_SIZE,
                              dtype=jnp.int32)
    # One-hot "gather" maps out-of-range ids to a zero embedding; check range
    # host-side so semantics match nn.Embedding for the given data.
    assert int(text.min()) >= 0 and int(text.max()) < VOCAB_SIZE

    packed = pack_params(emb_table, conv_ws, conv_bs, fcw, fcb)
    out = textcnn_forward(text, *packed)
    out = jax.block_until_ready(out)

    ref = reference(text, emb_table, conv_ws, conv_bs, fcw, fcb)
    assert out.shape == (BATCH, NUM_CLASSES), out.shape
    assert jnp.allclose(out, ref, atol=1e-4, rtol=1e-4), (
        float(jnp.max(jnp.abs(out - ref))))
    print("KERNEL_OK")
</pallas_src>

<mosaic_0001>
module attributes {stable_mosaic.version = 11 : i64} {
  func.func @textcnn_kernel(%arg0: memref<128x160xi32, #tpu.memory_space<vmem>>, %arg1: memref<160x384xf32, #tpu.memory_space<vmem>>, %arg2: memref<1x384xf32, #tpu.memory_space<vmem>>, %arg3: memref<384x128xf32, #tpu.memory_space<vmem>>, %arg4: memref<1x128xf32, #tpu.memory_space<vmem>>, %arg5: memref<8x128xf32, #tpu.memory_space<vmem>>) attributes {dimension_semantics = [], scalar_prefetch = 0 : i64, scratch_operands = 0 : i64, tpu.core_type = #tpu.core_type<tc>} {
    %0 = tpu.iota {dimensions = array<i32: 1>} : vector<128x160xi32>
    %c32_i32 = arith.constant 32 : i32
    %c0_i32 = arith.constant 0 : i32
    %1 = arith.cmpi eq, %c32_i32, %c0_i32 : i32
    %c1_i32 = arith.constant 1 : i32
    %2 = arith.select %1, %c1_i32, %c32_i32 : i32
    %3 = vector.broadcast %2 : i32 to vector<128x160xi32>
    %4 = arith.remsi %0, %3 : vector<128x160xi32>
    %c0_i32_0 = arith.constant 0 : i32
    %5 = vector.broadcast %c0_i32_0 : i32 to vector<128x160xi32>
    %6 = arith.cmpi ne, %4, %5 : vector<128x160xi32>
    %c0_i32_1 = arith.constant 0 : i32
    %7 = vector.broadcast %c0_i32_1 : i32 to vector<128x160xi32>
    %8 = arith.cmpi slt, %4, %7 : vector<128x160xi32>
    %c0_i32_2 = arith.constant 0 : i32
    %9 = arith.cmpi slt, %2, %c0_i32_2 : i32
    %10 = vector.broadcast %9 : i1 to vector<128x160xi1>
    %11 = vector.broadcast %10 : vector<128x160xi1> to vector<128x160xi1>
    %12 = arith.xori %8, %11 : vector<128x160xi1>
    %13 = arith.andi %12, %6 : vector<128x160xi1>
    %14 = vector.broadcast %2 : i32 to vector<128x160xi32>
    %15 = arith.addi %4, %14 : vector<128x160xi32>
    %16 = arith.select %13, %15, %4 : vector<128x160xi1>, vector<128x160xi32>
    %c0 = arith.constant 0 : index
    %c0_3 = arith.constant 0 : index
    %17 = vector.load %arg0[%c0, %c0_3] : memref<128x160xi32, #tpu.memory_space<vmem>>, vector<128x160xi32>
    %18 = arith.cmpi eq, %17, %16 : vector<128x160xi32>
    %19 = arith.extui %18 : vector<128x160xi1> to vector<128x160xi32>
    %20 = arith.sitofp %19 : vector<128x160xi32> to vector<128x160xf32>
    %c0_4 = arith.constant 0 : index
    %c0_5 = arith.constant 0 : index
    %21 = vector.load %arg1[%c0_4, %c0_5] : memref<160x384xf32, #tpu.memory_space<vmem>>, vector<160x384xf32>
    %cst = arith.constant dense<0.000000e+00> : vector<128x384xf32>
    %22 = tpu.matmul %20, %21, %cst {dimension_numbers = #tpu.dot_dimension_numbers<[1], [0], [0], [1], [0, 0, 1, 1], [], []>} : vector<128x160xf32>, vector<160x384xf32>, vector<128x384xf32> -> vector<128x384xf32>
    %c0_6 = arith.constant 0 : index
    %c0_7 = arith.constant 0 : index
    %23 = vector.load %arg2[%c0_6, %c0_7] : memref<1x384xf32, #tpu.memory_space<vmem>>, vector<1x384xf32>
    %24 = vector.broadcast %23 : vector<1x384xf32> to vector<128x384xf32>
    %25 = arith.addf %22, %24 : vector<128x384xf32>
    %cst_8 = arith.constant 0.000000e+00 : f32
    %26 = vector.broadcast %cst_8 : f32 to vector<128x384xf32>
    %27 = arith.maximumf %25, %26 : vector<128x384xf32>
    %28 = vector.shape_cast %27 : vector<128x384xf32> to vector<8x16x384xf32>
    %29 = vector.extract_strided_slice %28 {offsets = [0, 0, 0], sizes = [8, 14, 128], strides = [1, 1, 1]} : vector<8x16x384xf32> to vector<8x14x128xf32>
    %cst_9 = arith.constant dense<0xFF800000> : vector<8x128xf32>
    %30 = vector.multi_reduction <maximumf>, %29, %cst_9 [1] : vector<8x14x128xf32> to vector<8x128xf32>
    %31 = vector.extract_strided_slice %28 {offsets = [0, 0, 128], sizes = [8, 13, 128], strides = [1, 1, 1]} : vector<8x16x384xf32> to vector<8x13x128xf32>
    %cst_10 = arith.constant dense<0xFF800000> : vector<8x128xf32>
    %32 = vector.multi_reduction <maximumf>, %31, %cst_10 [1] : vector<8x13x128xf32> to vector<8x128xf32>
    %33 = vector.extract_strided_slice %28 {offsets = [0, 0, 256], sizes = [8, 12, 128], strides = [1, 1, 1]} : vector<8x16x384xf32> to vector<8x12x128xf32>
    %cst_11 = arith.constant dense<0xFF800000> : vector<8x128xf32>
    %34 = vector.multi_reduction <maximumf>, %33, %cst_11 [1] : vector<8x12x128xf32> to vector<8x128xf32>
    %35 = tpu.concatenate %30, %32, %34 in 1 : vector<8x128xf32>, vector<8x128xf32>, vector<8x128xf32> -> vector<8x384xf32>
    %c0_12 = arith.constant 0 : index
    %c0_13 = arith.constant 0 : index
    %36 = vector.load %arg3[%c0_12, %c0_13] : memref<384x128xf32, #tpu.memory_space<vmem>>, vector<384x128xf32>
    %cst_14 = arith.constant dense<0.000000e+00> : vector<8x128xf32>
    %37 = tpu.matmul %35, %36, %cst_14 {dimension_numbers = #tpu.dot_dimension_numbers<[1], [0], [0], [1], [0, 0, 1, 1], [], []>} : vector<8x384xf32>, vector<384x128xf32>, vector<8x128xf32> -> vector<8x128xf32>
    %c0_15 = arith.constant 0 : index
    %c0_16 = arith.constant 0 : index
    %38 = vector.load %arg4[%c0_15, %c0_16] : memref<1x128xf32, #tpu.memory_space<vmem>>, vector<1x128xf32>
    %39 = vector.broadcast %38 : vector<1x128xf32> to vector<8x128xf32>
    %40 = arith.addf %37, %39 : vector<8x128xf32>
    %c0_17 = arith.constant 0 : index
    %c0_18 = arith.constant 0 : index
    %41 = vector.load %arg5[%c0_17, %c0_18] : memref<8x128xf32, #tpu.memory_space<vmem>>, vector<8x128xf32>
    tpu.vector_store %arg5[%c0_17, %c0_18], %40 {strides = array<i32>} : memref<8x128xf32, #tpu.memory_space<vmem>>, vector<8x128xf32>,
    return
  }
}

</mosaic_0001>

<bundles_post_ra>
// kernel: textcnn_forward.1
= control target key start
LH: loop header
LB: loop body
LE: loop exit
PB: predicated region body
PF: predicated region fallthrough
CT: control target
= control target key end

     0   :  { %v1419_v0 = vmov 0.0|0.0   ;;  %v20_v26 = vlaneseq  ;;  %vm252_vm0 = vcmask 261120   ;;  %s2182_s1 = inlined_call_operand.vmem [shape: f32[160,384], index: 1, kind: input, shape index: {}]   ;;  %s2183_s0 = inlined_call_operand.vmem [shape: s32[128,160], index: 0, kind: input, shape index: {}]   ;;  %s2184_s3 = inlined_call_operand.vmem [shape: f32[384,128], index: 3, kind: input, shape index: {}]   ;;  %s2185_s2 = inlined_call_operand.vmem [shape: f32[1,384], index: 2, kind: input, shape index: {}]   ;;  %s2186_s4 = inlined_call_operand.vmem [shape: f32[1,128], index: 4, kind: input, shape index: {}]   ;;  %s2187_s5 = inlined_call_operand.vmem [shape: f32[8,128], index: 5, kind: output, shape index: {}]  }
   0x1   :  { %1329 = vmatprep.subr.bf16.mxu1 %v1419_v0  ;;  %v176_v1 = vld [vmem:[%s2182_s1 + $0x8] sm:$0xff]  ;;  %v179_v2 = vld [vmem:[%s2182_s1 + $0x20] sm:$0xff]  ;;  %v177_v3 = vld [vmem:[%s2182_s1 + $0x10] sm:$0xff] }
   0x2   :  { %v1289_v4 = vpack.c.bf16 %v179_v2, %v176_v1  ;;  %v180_v5 = vld [vmem:[%s2182_s1 + $0x28] sm:$0xff]  ;;  %v175_v6 = vld [vmem:[%s2182_s1] sm:$0xff]  ;;  %v178_v7 = vld [vmem:[%s2182_s1 + $0x18] sm:$0xff]  ;;  %v1529_v36 = vand.u32 127, %v20_v26 }
   0x3   :  { %v1330_v8 = vpack.c.bf16 %v180_v5, %v177_v3  ;;  %v1291_v9 = vpack.c.bf16 %v178_v7, %v175_v6  ;;  %v182_v10 = vld [vmem:[%s2182_s1 + $0x38] sm:$0xff]  ;;  %v185_v11 = vld [vmem:[%s2182_s1 + $0x50] sm:$0xff]  ;;  %v183_v12 = vld [vmem:[%s2182_s1 + $0x40] sm:$0xff]  ;;  %v1420_v6 = vmov 0.0  }
   0x4   :  { %1290 = vmatprep.subr.bf16.mxu0 %v1289_v4  ;;  %v1293_v13 = vpack.c.bf16 %v185_v11, %v182_v10  ;;  %v186_v14 = vld [vmem:[%s2182_s1 + $0x58] sm:$0xff]  ;;  %v181_v15 = vld [vmem:[%s2182_s1 + $0x30] sm:$0xff]  ;;  %v184_v16 = vld [vmem:[%s2182_s1 + $0x48] sm:$0xff]  ;;  %v22_v46 = vadd.s32 128, %v1529_v36 }
   0x5   :  { %1331 = vmatpush1.bf16.msra.mxu1 %v1330_v8  ;;  %1292 = vmatpush1.bf16.msra.mxu0 %v1291_v9  ;;  %v1333_v17 = vpack.c.bf16 %v186_v14, %v183_v12  ;;  %v1295_v18 = vpack.c.bf16 %v184_v16, %v181_v15  ;;  %v188_v19 = vld [vmem:[%s2182_s1 + $0x68] sm:$0xff]  ;;  %v191_v20 = vld [vmem:[%s2182_s1 + $0x80] sm:$0xff]  ;;  %v189_v21 = vld [vmem:[%s2182_s1 + $0x70] sm:$0xff] }
   0x6   :  { %1332 = vmatprep.subr.bf16.mxu1 %v1419_v0  ;;  %1294 = vmatprep.subr.bf16.mxu0 %v1293_v13  ;;  %v1297_v22 = vpack.c.bf16 %v191_v20, %v188_v19  ;;  %v192_v23 = vld [vmem:[%s2182_s1 + $0x88] sm:$0xff]  ;;  %v187_v24 = vld [vmem:[%s2182_s1 + $0x60] sm:$0xff]  ;;  %v190_v25 = vld [vmem:[%s2182_s1 + $0x78] sm:$0xff]  ;;  %v1570_v56 = vand.u32 31, %v22_v46  ;;  %v1421_v46 = vmov 1.0  }
   0x7   :  { %v194_v27 = vld [vmem:[%s2182_s1 + $0x98] sm:$0xff]  ;;  %v197_v28 = vld [vmem:[%s2182_s1 + $0xb0] sm:$0xff]  ;;  %v1336_v29 = vpack.c.bf16 %v192_v23, %v189_v21  ;;  %v1299_v30 = vpack.c.bf16 %v190_v25, %v187_v24  ;;  %v195_v31 = vld [vmem:[%s2182_s1 + $0xa0] sm:$0xff] }
   0x8   :  { %v1301_v32 = vpack.c.bf16 %v197_v28, %v194_v27  ;;  %v198_v33 = vld [vmem:[%s2182_s1 + $0xb8] sm:$0xff]  ;;  %v193_v34 = vld [vmem:[%s2182_s1 + $0x90] sm:$0xff]  ;;  %v196_v35 = vld [vmem:[%s2182_s1 + $0xa8] sm:$0xff] }
   0x9   :  { %1334 = vmatpush1.bf16.msra.mxu1 %v1333_v17  ;;  %1296 = vmatpush1.bf16.msra.mxu0 %v1295_v18  ;;  %v200_v37 = vld [vmem:[%s2182_s1 + $0xc8] sm:$0xff]  ;;  %v203_v38 = vld [vmem:[%s2182_s1 + $0xe0] sm:$0xff]  ;;  %v1339_v39 = vpack.c.bf16 %v198_v33, %v195_v31  ;;  %v1303_v40 = vpack.c.bf16 %v196_v35, %v193_v34  ;;  %v201_v41 = vld [vmem:[%s2182_s1 + $0xd0] sm:$0xff] }
   0xa   :  { %1335 = vmatprep.subr.bf16.mxu1 %v1419_v0  ;;  %1298 = vmatprep.subr.bf16.mxu0 %v1297_v22  ;;  %v1305_v42 = vpack.c.bf16 %v203_v38, %v200_v37  ;;  %v204_v43 = vld [vmem:[%s2182_s1 + $0xe8] sm:$0xff]  ;;  %v199_v44 = vld [vmem:[%s2182_s1 + $0xc0] sm:$0xff]  ;;  %v202_v45 = vld [vmem:[%s2182_s1 + $0xd8] sm:$0xff] }
   0xb   :  { %v206_v47 = vld [vmem:[%s2182_s1 + $0xf8] sm:$0xff]  ;;  %v209_v48 = vld [vmem:[%s2182_s1 + $0x110] sm:$0xff]  ;;  %v1342_v49 = vpack.c.bf16 %v204_v43, %v201_v41  ;;  %v1307_v50 = vpack.c.bf16 %v202_v45, %v199_v44  ;;  %v207_v51 = vld [vmem:[%s2182_s1 + $0x100] sm:$0xff] }
   0xc   :  { %v1309_v52 = vpack.c.bf16 %v209_v48, %v206_v47  ;;  %v210_v53 = vld [vmem:[%s2182_s1 + $0x118] sm:$0xff]  ;;  %v205_v54 = vld [vmem:[%s2182_s1 + $0xf0] sm:$0xff]  ;;  %v208_v55 = vld [vmem:[%s2182_s1 + $0x108] sm:$0xff] }
   0xd   :  { %1337 = vmatpush1.bf16.msra.mxu1 %v1336_v29  ;;  %1300 = vmatpush1.bf16.msra.mxu0 %v1299_v30  ;;  %v212_v57 = vld [vmem:[%s2182_s1 + $0x128] sm:$0xff]  ;;  %v215_v58 = vld [vmem:[%s2182_s1 + $0x140] sm:$0xff]  ;;  %v1345_v59 = vpack.c.bf16 %v210_v53, %v207_v51  ;;  %v1311_v60 = vpack.c.bf16 %v208_v55, %v205_v54  ;;  %v213_v61 = vld [vmem:[%s2182_s1 + $0x130] sm:$0xff] }
   0xe   :  { %1338 = vmatprep.subr.bf16.mxu1 %v1419_v0  ;;  %1302 = vmatprep.subr.bf16.mxu0 %v1301_v32  ;;  %v48_v62 = vld [vmem:[%s2183_s0 + $0x8] sm:$0xff]  ;;  %v1313_v63 = vpack.c.bf16 %v215_v58, %v212_v57  ;;  %v211_v2 = vld [vmem:[%s2182_s1 + $0x120] sm:$0xff]  ;;  %v214_v3 = vld [vmem:[%s2182_s1 + $0x138] sm:$0xff] }
   0xf   :  { %v216_v1 = vld [vmem:[%s2182_s1 + $0x148] sm:$0xff]  ;;  %vm80_vm1 = vcmp.eq.s32.totalorder %v48_v62, %v1570_v56  ;;  %v218_v4 = vld [vmem:[%s2182_s1 + $0x158] sm:$0xff]  ;;  %v221_v5 = vld [vmem:[%s2182_s1 + $0x170] sm:$0xff]  ;;  %v1315_v9 = vpack.c.bf16 %v214_v3, %v211_v2 }
  0x10   :  { %v1106_v7 = vsel %vm80_vm1, 1.0, %v1420_v6  ;;  %v1348_v8 = vpack.c.bf16 %v216_v1, %v213_v61  ;;  %v219_v10 = vld [vmem:[%s2182_s1 + $0x160] sm:$0xff]  ;;  %v1317_v11 = vpack.c.bf16 %v221_v5, %v218_v4  ;;  %v222_v12 = vld [vmem:[%s2182_s1 + $0x178] sm:$0xff]  ;;  %v217_v13 = vld [vmem:[%s2182_s1 + $0x150] sm:$0xff] }
  0x11   :  { %1340 = vmatpush1.bf16.msra.mxu1 %v1339_v39  ;;  %1304 = vmatpush1.bf16.msra.mxu0 %v1303_v40  ;;  %v220_v14 = vld [vmem:[%s2182_s1 + $0x168] sm:$0xff]  ;;  %v227_v16 = vld [vmem:[%s2182_s1 + $0x1a0] sm:$0xff]  ;;  %v225_v17 = vld [vmem:[%s2182_s1 + $0x190] sm:$0xff]  ;;  %v1351_v18 = vpack.c.bf16 %v222_v12, %v219_v10 }
  0x12   :  { %1341 = vmatprep.subr.bf16.mxu1 %v1419_v0  ;;  %1306 = vmatprep.subr.bf16.mxu0 %v1305_v42  ;;  %v224_v15 = vld [vmem:[%s2182_s1 + $0x188] sm:$0xff]  ;;  %v1319_v19 = vpack.c.bf16 %v220_v14, %v217_v13  ;;  %v1637_v22 = vld [vmem:[%s2183_s0 + $0xd8] sm:$0xff]  ;;  %v223_v24 = vld [vmem:[%s2182_s1 + $0x180] sm:$0xff]  ;;  %v1687_v42 = vand.u32 31, %v1529_v36 }
  0x13   :  { %1169 = vmatprep.mubr.msk.f32.mxu1 %vm252_vm0, %v1106_v7  ;;  %1137 = vmatprep.mubr.msk.f32.mxu0 %vm252_vm0, %v1106_v7  ;;  %v228_v20 = vld [vmem:[%s2182_s1 + $0x1a8] sm:$0xff]  ;;  %v1321_v23 = vpack.c.bf16 %v227_v16, %v224_v15  ;;  %v226_v25 = vld [vmem:[%s2182_s1 + $0x198] sm:$0xff]  ;;  %v233_v29 = vld [vmem:[%s2182_s1 + $0x1d0] sm:$0xff]  ;;  %vm106_vm3 = vcmp.eq.s32.totalorder %v1637_v22, %v1570_v56 }
  0x14   :  { %v1632_v21 = vld [vmem:[%s2183_s0 + $0xc8] sm:$0xff]  ;;  %v230_v28 = vld [vmem:[%s2182_s1 + $0x1b8] sm:$0xff]  ;;  %v1354_v31 = vpack.c.bf16 %v228_v20, %v225_v17  ;;  %v1323_v32 = vpack.c.bf16 %v226_v25, %v223_v24  ;;  %v231_v33 = vld [vmem:[%s2182_s1 + $0x1c0] sm:$0xff]  ;;  %v1132_v17 = vsel %vm106_vm3, 1.0, %v1420_v6 }
  0x15   :  { %1343 = vmatpush1.bf16.msra.mxu1 %v1342_v49  ;;  %1308 = vmatpush1.bf16.msra.mxu0 %v1307_v50  ;;  %v1649_v27 = vld [vmem:[%s2183_s0 + $0xe8] sm:$0xff]  ;;  %vm104_vm2 = vcmp.eq.s32.totalorder %v1632_v21, %v1570_v56  ;;  %v1664_v30 = vld [vmem:[%s2183_s0 + $0xf8] sm:$0xff]  ;;  %v1325_v34 = vpack.c.bf16 %v233_v29, %v230_v28  ;;  %v229_v37 = vld [vmem:[%s2182_s1 + $0x1b0] sm:$0xff] }
  0x16   :  { %1344 = vmatprep.subr.bf16.mxu1 %v1419_v0  ;;  %1310 = vmatprep.subr.bf16.mxu0 %v1309_v52  ;;  %vm108_vm4 = vcmp.eq.s32.totalorder %v1649_v27, %v1570_v56  ;;  %vm110_vm5 = vcmp.eq.s32.totalorder %v1664_v30, %v1570_v56  ;;  %v234_v35 = vld [vmem:[%s2182_s1 + $0x1d8] sm:$0xff]  ;;  %v232_v38 = vld [vmem:[%s2182_s1 + $0x1c8] sm:$0xff]  ;;  %v47_v43 = vld [vmem:[%s2183_s0] sm:$0xff]  ;;  %v1130_v15 = vsel %vm104_vm2, 1.0, %v1420_v6 }
  0x17   :  { %v50_v39 = vld [vmem:[%s2183_s0 + $0x18] sm:$0xff]  ;;  %v1357_v40 = vpack.c.bf16 %v234_v35, %v231_v33  ;;  %v1327_v41 = vpack.c.bf16 %v232_v38, %v229_v37  ;;  %v52_v44 = vld [vmem:[%s2183_s0 + $0x28] sm:$0xff]  ;;  %vm79_vm7 = vcmp.eq.s32.totalorder %v47_v43, %v1687_v42  ;;  %v49_v45 = vld [vmem:[%s2183_s0 + $0x10] sm:$0xff]  ;;  %v1136_v21 = vsel %vm110_vm5, 1.0, %v1420_v6 }
  0x18   :  { %vm82_vm6 = vcmp.eq.s32.totalorder %v50_v39, %v1570_v56  ;;  %vm84_vm8 = vcmp.eq.s32.totalorder %v52_v44, %v1570_v56  ;;  %v54_v47 = vld [vmem:[%s2183_s0 + $0x38] sm:$0xff]  ;;  %vm81_vm9 = vcmp.eq.s32.totalorder %v49_v45, %v1687_v42  ;;  %v51_v49 = vld [vmem:[%s2183_s0 + $0x20] sm:$0xff]  ;;  %v56_v50 = vld [vmem:[%s2183_s0 + $0x48] sm:$0xff]  ;;  %vm785_vm5 = vcmask 1043456  }
  0x19   :  { %1346 = vmatpush1.bf16.msra.mxu1 %v1345_v59  ;;  %1312 = vmatpush1.bf16.msra.mxu0 %v1311_v60  ;;  %v1108_v36 = vsel %vm82_vm6, 1.0, %v1420_v6  ;;  %v1110_v48 = vsel %vm84_vm8, 1.0, %v1420_v6  ;;  %vm86_vm10 = vcmp.eq.s32.totalorder %v54_v47, %v1570_v56  ;;  %vm83_vm11 = vcmp.eq.s32.totalorder %v51_v49, %v1687_v42  ;;  %v53_v52 = vld [vmem:[%s2183_s0 + $0x30] sm:$0xff]  ;;  %v58_v53 = vld [vmem:[%s2183_s0 + $0x58] sm:$0xff]  ;;  %v55_v55 = vld [vmem:[%s2183_s0 + $0x40] sm:$0xff] }
  0x1a   :  { %1347 = vmatprep.subr.bf16.mxu1 %v1419_v0  ;;  %1314 = vmatprep.subr.bf16.mxu0 %v1313_v63  ;;  %v1112_v51 = vsel %vm86_vm10, 1.0, %v1420_v6  ;;  %vm88_vm12 = vcmp.eq.s32.totalorder %v56_v50, %v1570_v56  ;;  %vm85_vm13 = vcmp.eq.s32.totalorder %v53_v52, %v1687_v42  ;;  %vm90_vm14 = vcmp.eq.s32.totalorder %v58_v53, %v1570_v56  ;;  %v60_v57 = vld [vmem:[%s2183_s0 + $0x68] sm:$0xff]  ;;  %v57_v59 = vld [vmem:[%s2183_s0 + $0x50] sm:$0xff]  ;;  %v62_v60 = vld [vmem:[%s2183_s0 + $0x78] sm:$0xff] }
  0x1b   :  { %v1114_v54 = vsel %vm88_vm12, 1.0, %v1420_v6  ;;  %vm87_vm15 = vcmp.eq.s32.totalorder %v55_v55, %v1687_v42  ;;  %v1116_v58 = vsel %vm90_vm14, 1.0, %v1420_v6  ;;  %vm92_vm1 = vcmp.eq.s32.totalorder %v60_v57, %v1570_v56  ;;  %v59_v62 = vld [vmem:[%s2183_s0 + $0x60] sm:$0xff]  ;;  %v64_v63 = vld [vmem:[%s2183_s0 + $0x88] sm:$0xff]  ;;  %v61_v2 = vld [vmem:[%s2183_s0 + $0x70] sm:$0xff] }
  0x1c   :  { %vm89_vm6 = vcmp.eq.s32.totalorder %v57_v59, %v1687_v42  ;;  %v1118_v61 = vsel %vm92_vm1, 1.0, %v1420_v6  ;;  %vm91_vm8 = vcmp.eq.s32.totalorder %v59_v62, %v1687_v42  ;;  %v66_v3 = vld [vmem:[%s2183_s0 + $0x98] sm:$0xff]  ;;  %vm93_vm10 = vcmp.eq.s32.totalorder %v61_v2, %v1687_v42  ;;  %v63_v5 = vld [vmem:[%s2183_s0 + $0x80] sm:$0xff]  ;;  %v68_v7 = vld [vmem:[%s2183_s0 + $0xa8] sm:$0xff] }
  0x1d   :  { %1349 = vmatpush1.bf16.msra.mxu1 %v1348_v8  ;;  %1316 = vmatpush1.bf16.msra.mxu0 %v1315_v9  ;;  %vm95_vm12 = vcmp.eq.s32.totalorder %v63_v5, %v1687_v42  ;;  %v65_v9 = vld [vmem:[%s2183_s0 + $0x90] sm:$0xff]  ;;  %v70_v10 = vld [vmem:[%s2183_s0 + $0xb8] sm:$0xff]  ;;  %v67_v12 = vld [vmem:[%s2183_s0 + $0xa0] sm:$0xff] }
  0x1e   :  { %1350 = vmatprep.subr.bf16.mxu1 %v1419_v0  ;;  %1318 = vmatprep.subr.bf16.mxu0 %v1317_v11  ;;  %vm97_vm14 = vcmp.eq.s32.totalorder %v65_v9, %v1687_v42  ;;  %vm99_vm1 = vcmp.eq.s32.totalorder %v67_v12, %v1687_v42  ;;  %v69_v14 = vld [vmem:[%s2183_s0 + $0xb0] sm:$0xff]  ;;  %v71_v16 = vld [vmem:[%s2183_s0 + $0xc0] sm:$0xff]  ;;  %v906_v27 = vld [vmem:[%s2184_s3 + $0x8] sm:$0xff] }
  0x1f   :  { %v75_v20 = vld [vmem:[%s2183_s0 + $0xe0] sm:$0xff]  ;;  %v77_v22 = vld [vmem:[%s2183_s0 + $0xf0] sm:$0xff]  ;;  %v938_v30 = vld [vmem:[%s2184_s3 + $0x108] sm:$0xff] }
  0x20   :  { %vm107_vm3 = vcmp.eq.s32.totalorder %v75_v20, %v1687_v42  ;;  %v905_v25 = vld [vmem:[%s2184_s3] sm:$0xff]  ;;  %v924_v33 = vld [vmem:[%s2184_s3 + $0x98] sm:$0xff]  ;;  %v907_v35 = vld [vmem:[%s2184_s3 + $0x10] sm:$0xff] }
  0x21   :  { %1352 = vmatpush1.bf16.msra.mxu1 %v1351_v18  ;;  %1320 = vmatpush1.bf16.msra.mxu0 %v1319_v19  ;;  %v73_v18 = vld [vmem:[%s2183_s0 + $0xd0] sm:$0xff]  ;;  %v1134_v19 = vsel %vm108_vm4, 1.0, %v1420_v6  ;;  %vm109_vm4 = vcmp.eq.s32.totalorder %v77_v22, %v1687_v42  ;;  %v1361_v28 = vpack.c.bf16 %v906_v27, %v905_v25  ;;  %v937_v29 = vld [vmem:[%s2184_s3 + $0x100] sm:$0xff]  ;;  %v908_v37 = vld [vmem:[%s2184_s3 + $0x18] sm:$0xff] }
  0x22   :  { %1353 = vmatprep.subr.bf16.mxu1 %v1419_v0  ;;  %1322 = vmatprep.subr.bf16.mxu0 %v1321_v23  ;;  %vm105_vm2 = vcmp.eq.s32.totalorder %v73_v18, %v1687_v42  ;;  %v922_v23 = vld [vmem:[%s2184_s3 + $0x88] sm:$0xff]  ;;  %v1365_v38 = vpack.c.bf16 %v908_v37, %v907_v35  ;;  %v939_v39 = vld [vmem:[%s2184_s3 + $0x110] sm:$0xff]  ;;  %v941_v47 = vld [vmem:[%s2184_s3 + $0x120] sm:$0xff] }
  0x23   :  { %v926_v43 = vld [vmem:[%s2184_s3 + $0xa8] sm:$0xff]  ;;  %v927_v50 = vld [vmem:[%s2184_s3 + $0xb0] sm:$0xff]  ;;  %v945_v62 = vld [vmem:[%s2184_s3 + $0x140] sm:$0xff] }
  0x24   :  { %v910_v45 = vld [vmem:[%s2184_s3 + $0x28] sm:$0xff]  ;;  %v911_v53 = vld [vmem:[%s2184_s3 + $0x30] sm:$0xff]  ;;  %v917_v22 = vld [vmem:[%s2184_s3 + $0x60] sm:$0xff] }
  0x25   :  { %1355 = vmatpush1.bf16.msra.mxu1 %v1354_v31  ;;  %1324 = vmatpush1.bf16.msra.mxu0 %v1323_v32  ;;  %v923_v31 = vld [vmem:[%s2184_s3 + $0x90] sm:$0xff]  ;;  %v1392_v32 = vpack.c.bf16 %v938_v30, %v937_v29  ;;  %v934_v20 = vld [vmem:[%s2184_s3 + $0xe8] sm:$0xff]  ;;  %v952_v25 = vld [vmem:[%s2184_s3 + $0x178] sm:$0xff] }
  0x26   :  { %1356 = vmatprep.subr.bf16.mxu1 %v1419_v0  ;;  %1326 = vmatprep.subr.bf16.mxu0 %v1325_v34  ;;  %v1363_v34 = vpack.c.bf16 %v924_v33, %v923_v31  ;;  %v943_v55 = vld [vmem:[%s2184_s3 + $0x130] sm:$0xff]  ;;  %v936_v29 = vld [vmem:[%s2184_s3 + $0xf8] sm:$0xff]  ;;  %v238_v33 = vshrl.u32 %v20_v26, 7  ;;  %v235_v37 = vld [vmem:[%s2185_s2] sm:$0x7] }
  0x27   :  { %v931_v9 = vld [vmem:[%s2184_s3 + $0xd0] sm:$0xff]  ;;  %v920_v31 = vld [vmem:[%s2184_s3 + $0x78] sm:$0xff] }
  0x28   :  { %v919_v30 = vld [vmem:[%s2184_s3 + $0x70] sm:$0xff]  ;;  %v247_v35 = vsub.s32 2, %v238_v33 }
  0x29   :  { %1358 = vmatpush1.bf16.msra.mxu1 %v1357_v40  ;;  %1328 = vmatpush1.bf16.msra.mxu0 %v1327_v41  ;;  %v940_v40 = vld [vmem:[%s2184_s3 + $0x118] sm:$0xff]  ;;  %v925_v41 = vld [vmem:[%s2184_s3 + $0xa0] sm:$0xff] }
  0x2a   :  { %1391 = vmatprep.subr.bf16.mxu1 %v1419_v0  ;;  %v1367_v44 = vpack.c.bf16 %v926_v43, %v925_v41 }
  0x2c   :  { %1170 = vmatmul.mubr.msk.f32.vlgmr.msra.gmra.mrb[0].mxu1 %vm79_vm7, %v1421_v46  ;;  %1138 = vmatmul.mubr.msk.f32.vlgmr.msra.gmra.mrb[0].mxu0 %vm79_vm7, %v1421_v46  ;;  %vm94_vm7 = vcmp.eq.s32.totalorder %v62_v60, %v1570_v56  ;;  %v929_v60 = vld [vmem:[%s2184_s3 + $0xc0] sm:$0xff] }
  0x2d   :  { %1171 = vmatprep.mubr.msk.f32.mxu1 %vm252_vm0, %v1108_v36  ;;  %1139 = vmatprep.mubr.msk.f32.mxu0 %vm252_vm0, %v1108_v36  ;;  %v1120_v1 = vsel %vm94_vm7, 1.0, %v1420_v6  ;;  %vm103_vm7 = vcmp.eq.s32.totalorder %v71_v16, %v1687_v42  ;;  %v909_v36 = vld [vmem:[%s2184_s3 + $0x20] sm:$0xff] }
  0x2e   :  { %1393 = vmatpush3.bf16.msra.mxu1 %v1392_v32  ;;  %v949_v16 = vld [vmem:[%s2184_s3 + $0x160] sm:$0xff]  ;;  %v1389_v32 = vpack.c.bf16 %v920_v31, %v919_v30 }
  0x2f   :  { %1394 = vmatprep.subr.bf16.mxu1 %v1419_v0 }
  0x30   :  { %1172 = vmatmul.mubr.msk.f32.gmra.mrb[2].mxu1 %vm81_vm9, %v1421_v46  ;;  %1140 = vmatmul.mubr.msk.f32.gmra.mrb[2].mxu0 %vm81_vm9, %v1421_v46  ;;  %vm96_vm9 = vcmp.eq.s32.totalorder %v64_v63, %v1570_v56 }
  0x31   :  { %1173 = vmatprep.mubr.msk.f32.mxu1 %vm252_vm0, %v1110_v48  ;;  %1141 = vmatprep.mubr.msk.f32.mxu0 %vm252_vm0, %v1110_v48  ;;  %v1122_v4 = vsel %vm96_vm9, 1.0, %v1420_v6  ;;  %v942_v48 = vld [vmem:[%s2184_s3 + $0x128] sm:$0xff]  ;;  %vm720_vm9 = vcmask 1044480  }
  0x32   :  { %v1398_v49 = vpack.c.bf16 %v942_v48, %v941_v47 }
  0x34   :  { %1174 = vmatmul.mubr.msk.f32.gmra.mrb[4].mxu1 %vm83_vm11, %v1421_v46  ;;  %1142 = vmatmul.mubr.msk.f32.gmra.mrb[4].mxu0 %vm83_vm11, %v1421_v46  ;;  %vm98_vm11 = vcmp.eq.s32.totalorder %v66_v3, %v1570_v56  ;;  %v913_v3 = vld [vmem:[%s2184_s3 + $0x40] sm:$0xff] }
  0x35   :  { %1175 = vmatprep.mubr.msk.f32.mxu1 %vm252_vm0, %v1112_v51  ;;  %1143 = vmatprep.mubr.msk.f32.mxu0 %vm252_vm0, %v1112_v51  ;;  %v1124_v8 = vsel %vm98_vm11, 1.0, %v1420_v6  ;;  %v928_v51 = vld [vmem:[%s2184_s3 + $0xb8] sm:$0xff]  ;;  %vm860_vm11 = vcmask 1042434  }
  0x36   :  { %v1371_v52 = vpack.c.bf16 %v928_v51, %v927_v50 }
  0x38   :  { %1176 = vmatmul.mubr.msk.f32.gmra.mrb[6].mxu1 %vm85_vm13, %v1421_v46  ;;  %1144 = vmatmul.mubr.msk.f32.gmra.mrb[6].mxu0 %vm85_vm13, %v1421_v46  ;;  %vm100_vm13 = vcmp.eq.s32.totalorder %v68_v7, %v1570_v56  ;;  %v947_v7 = vld [vmem:[%s2184_s3 + $0x150] sm:$0xff] }
  0x39   :  { %1177 = vmatprep.mubr.msk.f32.mxu1 %vm252_vm0, %v1114_v54  ;;  %1145 = vmatprep.mubr.msk.f32.mxu0 %vm252_vm0, %v1114_v54  ;;  %v1126_v11 = vsel %vm100_vm13, 1.0, %v1420_v6  ;;  %v912_v54 = vld [vmem:[%s2184_s3 + $0x38] sm:$0xff]  ;;  %vm864_vm13 = vcmask 1044484  }
  0x3a   :  { %v1373_v57 = vpack.c.bf16 %v912_v54, %v911_v53 }
  0x3c   :  { %1178 = vmatmul.mubr.msk.f32.gmra.mrb[8].mxu1 %vm87_vm15, %v1421_v46  ;;  %1146 = vmatmul.mubr.msk.f32.gmra.mrb[8].mxu0 %vm87_vm15, %v1421_v46  ;;  %vm102_vm15 = vcmp.eq.s32.totalorder %v70_v10, %v1570_v56  ;;  %v921_v56 = vld [vmem:[%s2184_s3 + $0x80] sm:$0xff]  ;;  %v932_v10 = vld [vmem:[%s2184_s3 + $0xd8] sm:$0xff] }
  0x3d   :  { %1179 = vmatprep.mubr.msk.f32.mxu1 %vm252_vm0, %v1116_v58  ;;  %1147 = vmatprep.mubr.msk.f32.mxu0 %vm252_vm0, %v1116_v58  ;;  %v1128_v13 = vsel %vm102_vm15, 1.0, %v1420_v6  ;;  %v1359_v24 = vpack.c.bf16 %v922_v23, %v921_v56  ;;  %v944_v58 = vld [vmem:[%s2184_s3 + $0x138] sm:$0xff]  ;;  %v1379_v12 = vpack.c.bf16 %v932_v10, %v931_v9  ;;  %v918_v56 = vld [vmem:[%s2184_s3 + $0x68] sm:$0xff]  ;;  %vm868_vm15 = vcmask 1046534  }
  0x3e   :  { %v1401_v59 = vpack.c.bf16 %v944_v58, %v943_v55  ;;  %v1385_v23 = vpack.c.bf16 %v918_v56, %v917_v22 }
  0x3f   :  { %1360 = vmatprep.subr.bf16.mxu0 %v1359_v24  ;;  %v951_v24 = vld [vmem:[%s2184_s3 + $0x170] sm:$0xff] }
  0x40   :  { %1180 = vmatmul.mubr.msk.f32.gmra.mrb[10].mxu1 %vm89_vm6, %v1421_v46  ;;  %1148 = vmatmul.mubr.msk.f32.gmra.mrb[10].mxu0 %vm89_vm6, %v1421_v46  ;;  %vm101_vm6 = vcmp.eq.s32.totalorder %v69_v14, %v1687_v42  ;;  %v1395_v42 = vpack.c.bf16 %v940_v40, %v939_v39  ;;  %v916_v14 = vld [vmem:[%s2184_s3 + $0x58] sm:$0xff]  ;;  %v1413_v27 = vpack.c.bf16 %v952_v25, %v951_v24 }
  0x41   :  { %1181 = vmatprep.mubr.msk.f32.mxu1 %vm252_vm0, %v1118_v61  ;;  %1149 = vmatprep.mubr.msk.f32.mxu0 %vm252_vm0, %v1118_v61  ;;  %v930_v61 = vld [vmem:[%s2184_s3 + $0xc8] sm:$0xff]  ;;  %v2043_v40 = vrot.slane %v235_v37, %v247_v35 }
  0x42   :  { %1362 = vmatpush3.bf16.msra.mxu0 %v1361_v28  ;;  %1396 = vmatpush3.bf16.msra.mxu1 %v1395_v42  ;;  %v1375_v63 = vpack.c.bf16 %v930_v61, %v929_v60  ;;  %v935_v28 = vld [vmem:[%s2184_s3 + $0xf0] sm:$0xff] }
  0x43   :  { %1364 = vmatprep.subr.bf16.mxu0 %v1363_v34  ;;  %1397 = vmatprep.subr.bf16.mxu1 %v1419_v0  ;;  %v239_v34 = vsub.s32 0, %v238_v33 }
  0x44   :  { %1182 = vmatmul.mubr.msk.f32.gmra.mrb[12].mxu1 %vm91_vm8, %v1421_v46  ;;  %1150 = vmatmul.mubr.msk.f32.gmra.mrb[12].mxu0 %vm91_vm8, %v1421_v46  ;;  %vm655_vm8 = vcmask 1045504  }
  0x45   :  { %1183 = vmatprep.mubr.msk.f32.mxu1 %vm252_vm0, %v1120_v1  ;;  %1151 = vmatprep.mubr.msk.f32.mxu0 %vm252_vm0, %v1120_v1  ;;  %v946_v1 = vld [vmem:[%s2184_s3 + $0x148] sm:$0xff]  ;;  %v2041_v39 = vrot.slane %v235_v37, %v239_v34 }
  0x46   :  { %1366 = vmatpush3.bf16.msra.mxu0 %v1365_v38  ;;  %1399 = vmatpush3.bf16.msra.mxu1 %v1398_v49  ;;  %v1404_v2 = vpack.c.bf16 %v946_v1, %v945_v62  ;;  %v243_v38 = vsub.s32 1, %v238_v33 }
  0x47   :  { %1368 = vmatprep.subr.bf16.mxu0 %v1367_v44  ;;  %1400 = vmatprep.subr.bf16.mxu1 %v1419_v0 }
  0x48   :  { %1184 = vmatmul.mubr.msk.f32.gmra.mrb[14].mxu1 %vm93_vm10, %v1421_v46  ;;  %1152 = vmatmul.mubr.msk.f32.gmra.mrb[14].mxu0 %vm93_vm10, %v1421_v46  ;;  %v2045_v41 = vrot.slane %v235_v37, %v243_v38  ;;  %vm858_vm10 = vcmask 1041409  }
  0x49   :  { %1185 = vmatprep.mubr.msk.f32.mxu1 %vm252_vm0, %v1122_v4  ;;  %1153 = vmatprep.mubr.msk.f32.mxu0 %vm252_vm0, %v1122_v4  ;;  %v914_v4 = vld [vmem:[%s2184_s3 + $0x48] sm:$0xff] }
  0x4a   :  { %1402 = vmatpush3.bf16.msra.mxu1 %v1401_v59  ;;  %v1377_v5 = vpack.c.bf16 %v914_v4, %v913_v3 }
  0x4b   :  { %1403 = vmatprep.subr.bf16.mxu1 %v1419_v0 }
  0x4c   :  { %1186 = vmatmul.mubr.msk.f32.gmra.mrb[16].mxu1 %vm95_vm12, %v1421_v46  ;;  %1154 = vmatmul.mubr.msk.f32.gmra.mrb[16].mxu0 %vm95_vm12, %v1421_v46  ;;  %vm862_vm12 = vcmask 1043459  }
  0x4d   :  { %1187 = vmatprep.mubr.msk.f32.mxu1 %vm252_vm0, %v1124_v8  ;;  %1155 = vmatprep.mubr.msk.f32.mxu0 %vm252_vm0, %v1124_v8  ;;  %v948_v8 = vld [vmem:[%s2184_s3 + $0x158] sm:$0xff] }
  0x4e   :  { %1405 = vmatpush3.bf16.msra.mxu1 %v1404_v2 }
  0x4f   :  { %1406 = vmatprep.subr.bf16.mxu1 %v1419_v0 }
  0x50   :  { %1188 = vmatmul.mubr.msk.f32.gmra.mrb[18].mxu1 %vm97_vm14, %v1421_v46  ;;  %1156 = vmatmul.mubr.msk.f32.gmra.mrb[18].mxu0 %vm97_vm14, %v1421_v46  ;;  %vm866_vm14 = vcmask 1045509  }
  0x51   :  { %1189 = vmatprep.mubr.msk.f32.mxu1 %vm252_vm0, %v1126_v11  ;;  %1157 = vmatprep.mubr.msk.f32.mxu0 %vm252_vm0, %v1126_v11  ;;  %v1407_v11 = vpack.c.bf16 %v948_v8, %v947_v7 }
  0x53   :  { %1408 = vmatpush3.bf16.msra.mxu1 %v1407_v11 }
  0x54   :  { %1190 = vmatmul.mubr.msk.f32.gmra.mrb[20].mxu1 %vm99_vm1, %v1421_v46  ;;  %1158 = vmatmul.mubr.msk.f32.gmra.mrb[20].mxu0 %vm99_vm1, %v1421_v46  ;;  %vm870_vm1 = vcmask 1047559  }
  0x55   :  { %1191 = vmatprep.mubr.msk.f32.mxu1 %vm252_vm0, %v1128_v13  ;;  %1159 = vmatprep.mubr.msk.f32.mxu0 %vm252_vm0, %v1128_v13  ;;  %v915_v13 = vld [vmem:[%s2184_s3 + $0x50] sm:$0xff] }
  0x56   :  { %1409 = vmatprep.subr.bf16.mxu1 %v1419_v0 }
  0x58   :  { %1192 = vmatmul.mubr.msk.f32.gmra.mrb[22].mxu1 %vm101_vm6, %v1421_v46  ;;  %1160 = vmatmul.mubr.msk.f32.gmra.mrb[22].mxu0 %vm101_vm6, %v1421_v46 }
  0x59   :  { %1193 = vmatprep.mubr.msk.f32.mxu1 %vm252_vm0, %v1130_v15  ;;  %1161 = vmatprep.mubr.msk.f32.mxu0 %vm252_vm0, %v1130_v15  ;;  %v1381_v15 = vpack.c.bf16 %v916_v14, %v915_v13 }
  0x5c   :  { %1194 = vmatmul.mubr.msk.f32.gmra.mrb[24].mxu1 %vm103_vm7, %v1421_v46  ;;  %1162 = vmatmul.mubr.msk.f32.gmra.mrb[24].mxu0 %vm103_vm7, %v1421_v46 }
  0x5d   :  { %1195 = vmatprep.mubr.msk.f32.mxu1 %vm252_vm0, %v1132_v17  ;;  %1163 = vmatprep.mubr.msk.f32.mxu0 %vm252_vm0, %v1132_v17  ;;  %v950_v17 = vld [vmem:[%s2184_s3 + $0x168] sm:$0xff] }
  0x5e   :  { %v1410_v18 = vpack.c.bf16 %v950_v17, %v949_v16 }
  0x60   :  { %1196 = vmatmul.mubr.msk.f32.gmra.mrb[26].mxu1 %vm105_vm2, %v1421_v46  ;;  %1164 = vmatmul.mubr.msk.f32.gmra.mrb[26].mxu0 %vm105_vm2, %v1421_v46 }
  0x61   :  { %1197 = vmatprep.mubr.msk.f32.mxu1 %vm252_vm0, %v1134_v19  ;;  %1165 = vmatprep.mubr.msk.f32.mxu0 %vm252_vm0, %v1134_v19  ;;  %v933_v19 = vld [vmem:[%s2184_s3 + $0xe0] sm:$0xff] }
  0x62   :  { %1411 = vmatpush3.bf16.msra.mxu1 %v1410_v18 }
  0x63   :  { %1412 = vmatprep.subr.bf16.mxu1 %v1419_v0  ;;  %v1387_v0 = vpack.c.bf16 %v936_v29, %v935_v28 }
  0x64   :  { %1198 = vmatmul.mubr.msk.f32.gmra.mrb[28].mxu1 %vm107_vm3, %v1421_v46  ;;  %1166 = vmatmul.mubr.msk.f32.gmra.mrb[28].mxu0 %vm107_vm3, %v1421_v46 }
  0x65   :  { %1199 = vmatprep.mubr.msk.f32.mxu1 %vm252_vm0, %v1136_v21  ;;  %1167 = vmatprep.mubr.msk.f32.mxu0 %vm252_vm0, %v1136_v21  ;;  %v1383_v21 = vpack.c.bf16 %v934_v20, %v933_v19  ;;  %vm1422_vm0 = vmmov 0  }
  0x66   :  { %1414 = vmatpush3.bf16.msra.mxu1 %v1413_v27 }
  0x68   :  { %1200 = vmatmul.mubr.msk.f32.gmra.mrb[30].mxu1 %vm109_vm4, %v1421_v46  ;;  %1168 = vmatmul.mubr.msk.f32.gmra.mrb[30].mxu0 %vm109_vm4, %v1421_v46  ;;  %v1369_v46 = vpack.c.bf16 %v910_v45, %v909_v36 }
  0x69   :  { %1286 = vmatprep.mubr.msk.f32.mxu1 %vm1422_vm0, %v1420_v6 }
  0x6a   :  { %1370 = vmatpush3.bf16.msra.mxu0 %v1369_v46 }
  0x6b   :  { %1372 = vmatprep.subr.bf16.mxu0 %v1371_v52 }
  0x6e   :  { %1374 = vmatpush3.bf16.msra.mxu0 %v1373_v57 }
  0x6f   :  { %1376 = vmatprep.subr.bf16.mxu0 %v1375_v63 }
  0x72   :  { %1378 = vmatpush3.bf16.msra.mxu0 %v1377_v5 }
  0x73   :  { %1380 = vmatprep.subr.bf16.mxu0 %v1379_v12 }
  0x76   :  { %1382 = vmatpush3.bf16.msra.mxu0 %v1381_v15 }
  0x77   :  { %1384 = vmatprep.subr.bf16.mxu0 %v1383_v21 }
  0x7a   :  { %1386 = vmatpush3.bf16.msra.mxu0 %v1385_v23 }
  0x7b   :  { %1388 = vmatprep.subr.bf16.mxu0 %v1387_v0 }
  0x7e   :  { %1390 = vmatpush3.bf16.msra.mxu0 %v1389_v32 }
  0xff   :  { %v367_v42 = vpop.f32.mrb[0].mxu0  ;;  %v528_v43 = vpop.f32.mrb[0].mxu1 }
 0x100   :  { %v368_v6 = vadd.f32 %v367_v42, %v2041_v39  ;;  %v369_v44 = vpop.f32.mrb[1].mxu0  ;;  %v529_v26 = vadd.f32 %v528_v43, %v2043_v40  ;;  %v530_v36 = vpop.f32.mrb[1].mxu1 }
 0x101   :  { %v370_v45 = vadd.f32 %v369_v44, %v2045_v41 }
 0x102   :  { %v609_v52 = vmax.f32 %v529_v26, 0.0  ;;  %v607_v57 = vmax.f32 %v368_v6, 0.0 }
 0x103   :  { %v533_v46 = vpop.f32.mrb[2].mxu1  ;;  %v373_v47 = vpop.f32.mrb[2].mxu0  ;;  %v608_v58 = vmax.f32 %v370_v45, 0.0 }
 0x104   :  { %v534_v48 = vadd.f32 %v533_v46, %v2043_v40  ;;  %v374_v49 = vadd.f32 %v373_v47, %v2041_v39  ;;  %v375_v50 = vpop.f32.mrb[3].mxu0  ;;  %v535_v51 = vpop.f32.mrb[3].mxu1 }
 0x105   :  { %v376_v53 = vadd.f32 %v375_v50, %v2045_v41 }
 0x106   :  { %v612_v54 = vmax.f32 %v534_v48, 0.0  ;;  %v610_v55 = vmax.f32 %v374_v49, 0.0 }
 0x107   :  { %v611_v59 = vmax.f32 %v376_v53, 0.0  ;;  %v379_v60 = vpop.f32.mrb[4].mxu0  ;;  %v538_v61 = vpop.f32.mrb[4].mxu1 }
 0x108   :  { %v786_v62 = vsel %vm785_vm5, %v612_v54, -inf  ;;  %v656_v63 = vsel %vm655_vm8, %v610_v55, -inf  ;;  %v380_v1 = vadd.f32 %v379_v60, %v2041_v39  ;;  %v381_v2 = vpop.f32.mrb[5].mxu0  ;;  %v539_v3 = vadd.f32 %v538_v61, %v2043_v40  ;;  %v540_v4 = vpop.f32.mrb[5].mxu1 }
 0x109   :  { %v787_v5 = vmax.f32 %v609_v52, %v786_v62  ;;  %v657_v7 = vmax.f32 %v607_v57, %v656_v63  ;;  %v721_v8 = vsel %vm720_vm9, %v611_v59, -inf  ;;  %v382_v9 = vadd.f32 %v381_v2, %v2045_v41 }
 0x10a   :  { %v722_v10 = vmax.f32 %v608_v58, %v721_v8  ;;  %v615_v22 = vmax.f32 %v539_v3, 0.0  ;;  %v613_v24 = vmax.f32 %v380_v1, 0.0 }
 0x10b   :  { %v788_v11 = vrot.slane %v787_v5, 4  ;;  %v658_v12 = vrot.slane %v657_v7, 4  ;;  %v543_v13 = vpop.f32.mrb[6].mxu1  ;;  %v385_v14 = vpop.f32.mrb[6].mxu0  ;;  %v614_v0 = vmax.f32 %v382_v9, 0.0 }
 0x10c   :  { %v723_v15 = vrot.slane %v722_v10, 4  ;;  %v544_v16 = vadd.f32 %v543_v13, %v2043_v40  ;;  %v386_v17 = vadd.f32 %v385_v14, %v2041_v39  ;;  %v387_v18 = vpop.f32.mrb[7].mxu0  ;;  %v545_v19 = vpop.f32.mrb[7].mxu1 }
 0x10d   :  { %v789_v20 = vmax.f32 %v787_v5, %v788_v11  ;;  %v659_v21 = vmax.f32 %v657_v7, %v658_v12  ;;  %v388_v56 = vadd.f32 %v387_v18, %v2045_v41 }
 0x10e   :  { %v724_v23 = vmax.f32 %v722_v10, %v723_v15  ;;  %v618_v25 = vmax.f32 %v544_v16, 0.0  ;;  %v616_v27 = vmax.f32 %v386_v17, 0.0 }
 0x10f   :  { %v790_v28 = vrot.slane %v789_v20, 2  ;;  %v660_v29 = vrot.slane %v659_v21, 2  ;;  %v617_v30 = vmax.f32 %v388_v56, 0.0  ;;  %v391_v31 = vpop.f32.mrb[8].mxu0  ;;  %v548_v32 = vpop.f32.mrb[8].mxu1 }
 0x110   :  { %v725_v33 = vrot.slane %v724_v23, 2  ;;  %v794_v34 = vsel %vm785_vm5, %v618_v25, -inf  ;;  %v664_v35 = vsel %vm655_vm8, %v616_v27, -inf  ;;  %v392_v37 = vadd.f32 %v391_v31, %v2041_v39  ;;  %v393_v38 = vpop.f32.mrb[9].mxu0  ;;  %v550_v42 = vpop.f32.mrb[9].mxu1 }
 0x111   :  { %v791_v43 = vmax.f32 %v789_v20, %v790_v28  ;;  %v661_v6 = vmax.f32 %v659_v21, %v660_v29  ;;  %v795_v44 = vmax.f32 %v615_v22, %v794_v34  ;;  %v665_v26 = vmax.f32 %v613_v24, %v664_v35 }
 0x112   :  { %v726_v36 = vmax.f32 %v724_v23, %v725_v33  ;;  %v729_v45 = vsel %vm720_vm9, %v617_v30, -inf  ;;  %v619_v46 = vmax.f32 %v392_v37, 0.0  ;;  %v394_v47 = vadd.f32 %v393_v38, %v2045_v41 }
 0x113   :  { %v792_v48 = vrot.slane %v791_v43, 1  ;;  %v662_v49 = vrot.slane %v661_v6, 1  ;;  %v796_v50 = vrot.slane %v795_v44, 4  ;;  %v666_v51 = vrot.slane %v665_v26, 4  ;;  %v553_v52 = vpop.f32.mrb[10].mxu1  ;;  %v397_v53 = vpop.f32.mrb[10].mxu0 }
 0x114   :  { %v727_v54 = vrot.slane %v726_v36, 1  ;;  %v730_v55 = vmax.f32 %v614_v0, %v729_v45  ;;  %v620_v57 = vmax.f32 %v394_v47, 0.0  ;;  %v549_v58 = vadd.f32 %v548_v32, %v2043_v40  ;;  %v399_v59 = vpop.f32.mrb[11].mxu0  ;;  %v555_v60 = vpop.f32.mrb[11].mxu1 }
 0x115   :  { %v793_v61 = vmax.f32 %v791_v43, %v792_v48  ;;  %v663_v62 = vmax.f32 %v661_v6, %v662_v49  ;;  %v797_v63 = vmax.f32 %v795_v44, %v796_v50  ;;  %v667_v1 = vmax.f32 %v665_v26, %v666_v51 }
 0x116   :  { %v728_v2 = vmax.f32 %v726_v36, %v727_v54  ;;  %v731_v3 = vrot.slane %v730_v55, 4  ;;  %v621_v4 = vmax.f32 %v549_v58, 0.0  ;;  %v554_v5 = vadd.f32 %v553_v52, %v2043_v40 }
 0x117   :  { %v798_v7 = vrot.slane %v797_v63, 2  ;;  %v668_v8 = vrot.slane %v667_v1, 2  ;;  %v398_v9 = vadd.f32 %v397_v53, %v2041_v39  ;;  %v400_v10 = vadd.f32 %v399_v59, %v2045_v41  ;;  %v403_v11 = vpop.f32.mrb[12].mxu0  ;;  %v558_v12 = vpop.f32.mrb[12].mxu1 }
 0x118   :  { %v732_v13 = vmax.f32 %v730_v55, %v731_v3  ;;  %v624_v14 = vmax.f32 %v554_v5, 0.0  ;;  %v2072_v15 = vadd.f32 %v403_v11, %v2041_v39  ;;  %v405_v16 = vpop.f32.mrb[13].mxu0  ;;  %v559_v17 = vadd.f32 %v558_v12, %v2043_v40  ;;  %v560_v18 = vpop.f32.mrb[13].mxu1 }
 0x119   :  { %v799_v19 = vmax.f32 %v797_v63, %v798_v7  ;;  %v669_v20 = vmax.f32 %v667_v1, %v668_v8  ;;  %v622_v21 = vmax.f32 %v398_v9, 0.0  ;;  %v623_v22 = vmax.f32 %v400_v10, 0.0 }
 0x11a   :  { %v733_v56 = vrot.slane %v732_v13, 2  ;;  %v802_v23 = vsel %vm785_vm5, %v624_v14, -inf  ;;  %v625_v24 = vmax.f32 %v2072_v15, 0.0  ;;  %v2078_v25 = vadd.f32 %v405_v16, %v2045_v41 }
 0x11b   :  { %v800_v27 = vrot.slane %v799_v19, 1  ;;  %v670_v28 = vrot.slane %v669_v20, 1  ;;  %v803_v29 = vmax.f32 %v621_v4, %v802_v23  ;;  %v672_v0 = vsel %vm655_vm8, %v622_v21, -inf  ;;  %v563_v30 = vpop.f32.mrb[14].mxu1  ;;  %v409_v31 = vpop.f32.mrb[14].mxu0 }
 0x11c   :  { %v734_v32 = vmax.f32 %v732_v13, %v733_v56  ;;  %v673_v33 = vmax.f32 %v619_v46, %v672_v0  ;;  %v737_v34 = vsel %vm720_vm9, %v623_v22, -inf  ;;  %v626_v35 = vmax.f32 %v2078_v25, 0.0  ;;  %v411_v37 = vpop.f32.mrb[15].mxu0  ;;  %v565_v38 = vpop.f32.mrb[15].mxu1 }
 0x11d   :  { %v801_v42 = vmax.f32 %v799_v19, %v800_v27  ;;  %v671_v43 = vmax.f32 %v669_v20, %v670_v28  ;;  %v804_v6 = vrot.slane %v803_v29, 4  ;;  %v738_v44 = vmax.f32 %v620_v57, %v737_v34 }
 0x11e   :  { %v735_v26 = vrot.slane %v734_v32, 1  ;;  %v674_v36 = vrot.slane %v673_v33, 4  ;;  %v627_v45 = vmax.f32 %v559_v17, 0.0  ;;  %v564_v47 = vadd.f32 %v563_v30, %v2043_v40 }
 0x11f   :  { %v897_v48 = vsel %vm858_vm10, %v801_v42, %v793_v61  ;;  %v859_v46 = vsel %vm858_vm10, %v671_v43, %v663_v62  ;;  %v805_v49 = vmax.f32 %v803_v29, %v804_v6  ;;  %v739_v50 = vrot.slane %v738_v44, 4  ;;  %v415_v51 = vpop.f32.mrb[16].mxu0  ;;  %v568_v52 = vpop.f32.mrb[16].mxu1 }
 0x120   :  { %v736_v53 = vmax.f32 %v734_v32, %v735_v26  ;;  %v675_v54 = vmax.f32 %v673_v33, %v674_v36  ;;  %v630_v55 = vmax.f32 %v564_v47, 0.0  ;;  %v410_v58 = vadd.f32 %v409_v31, %v2041_v39  ;;  %v417_v57 = vpop.f32.mrb[17].mxu0  ;;  %v570_v59 = vpop.f32.mrb[17].mxu1 }
 0x121   :  { %v806_v60 = vrot.slane %v805_v49, 2  ;;  %v740_v63 = vmax.f32 %v738_v44, %v739_v50  ;;  %v412_v1 = vadd.f32 %v411_v37, %v2045_v41  ;;  %v2089_v3 = vadd.f32 %v415_v51, %v2041_v39 }
 0x122   :  { %v2092_v61 = vsel %vm858_vm10, %v736_v53, %v728_v2  ;;  %v676_v62 = vrot.slane %v675_v54, 2  ;;  %v810_v4 = vsel %vm785_vm5, %v630_v55, -inf  ;;  %v628_v5 = vmax.f32 %v410_v58, 0.0 }
 0x123   :  { %v807_v7 = vmax.f32 %v805_v49, %v806_v60  ;;  %v741_v8 = vrot.slane %v740_v63, 2  ;;  %v811_v9 = vmax.f32 %v627_v45, %v810_v4  ;;  %v629_v10 = vmax.f32 %v412_v1, 0.0  ;;  %v573_v11 = vpop.f32.mrb[18].mxu1  ;;  %v421_v12 = vpop.f32.mrb[18].mxu0 }
 0x124   :  { %v677_v13 = vmax.f32 %v675_v54, %v676_v62  ;;  %v680_v14 = vsel %vm655_vm8, %v628_v5, -inf  ;;  %v631_v15 = vmax.f32 %v2089_v3, 0.0  ;;  %v2098_v16 = vadd.f32 %v417_v57, %v2045_v41  ;;  %v423_v2 = vpop.f32.mrb[19].mxu0  ;;  %v575_v17 = vpop.f32.mrb[19].mxu1 }
 0x125   :  { %v808_v18 = vrot.slane %v807_v7, 1  ;;  %v742_v19 = vmax.f32 %v740_v63, %v741_v8  ;;  %v812_v20 = vrot.slane %v811_v9, 4  ;;  %v681_v21 = vmax.f32 %v625_v24, %v680_v14 }
 0x126   :  { %v678_v22 = vrot.slane %v677_v13, 1  ;;  %v745_v56 = vsel %vm720_vm9, %v629_v10, -inf  ;;  %v632_v23 = vmax.f32 %v2098_v16, 0.0  ;;  %v569_v25 = vadd.f32 %v568_v52, %v2043_v40 }
 0x127   :  { %v809_v27 = vmax.f32 %v807_v7, %v808_v18  ;;  %v743_v28 = vrot.slane %v742_v19, 1  ;;  %v813_v29 = vmax.f32 %v811_v9, %v812_v20  ;;  %v682_v0 = vrot.slane %v681_v21, 4  ;;  %v427_v30 = vpop.f32.mrb[20].mxu0  ;;  %v578_v31 = vpop.f32.mrb[20].mxu1 }
 0x128   :  { %v679_v32 = vmax.f32 %v677_v13, %v678_v22  ;;  %v746_v33 = vmax.f32 %v626_v35, %v745_v56  ;;  %v633_v34 = vmax.f32 %v569_v25, 0.0  ;;  %v574_v37 = vadd.f32 %v573_v11, %v2043_v40  ;;  %v429_v24 = vpop.f32.mrb[21].mxu0  ;;  %v580_v38 = vpop.f32.mrb[21].mxu1 }
 0x129   :  { %v898_v42 = vsel %vm860_vm11, %v809_v27, %v897_v48  ;;  %v2105_v43 = vmax.f32 %v742_v19, %v743_v28  ;;  %v814_v6 = vrot.slane %v813_v29, 2  ;;  %v683_v44 = vmax.f32 %v681_v21, %v682_v0 }
 0x12a   :  { %v861_v26 = vsel %vm860_vm11, %v679_v32, %v859_v46  ;;  %v747_v36 = vrot.slane %v746_v33, 4  ;;  %v636_v45 = vmax.f32 %v574_v37, 0.0  ;;  %v422_v47 = vadd.f32 %v421_v12, %v2041_v39 }
 0x12b   :  { %v815_v49 = vmax.f32 %v813_v29, %v814_v6  ;;  %v684_v50 = vrot.slane %v683_v44, 2  ;;  %v424_v35 = vadd.f32 %v423_v2, %v2045_v41  ;;  %v2111_v51 = vadd.f32 %v427_v30, %v2041_v39  ;;  %v583_v52 = vpop.f32.mrb[22].mxu1  ;;  %v433_v53 = vpop.f32.mrb[22].mxu0 }
 0x12c   :  { %v748_v48 = vmax.f32 %v746_v33, %v747_v36  ;;  %v818_v54 = vsel %vm785_vm5, %v636_v45, -inf  ;;  %v634_v55 = vmax.f32 %v422_v47, 0.0  ;;  %v2115_v58 = vadd.f32 %v429_v24, %v2045_v41  ;;  %v435_v46 = vpop.f32.mrb[23].mxu0  ;;  %v585_v57 = vpop.f32.mrb[23].mxu1 }
 0x12d   :  { %v816_v59 = vrot.slane %v815_v49, 1  ;;  %v685_v60 = vmax.f32 %v683_v44, %v684_v50  ;;  %v819_v63 = vmax.f32 %v633_v34, %v818_v54  ;;  %v635_v1 = vmax.f32 %v424_v35, 0.0 }
 0x12e   :  { %v749_v3 = vrot.slane %v748_v48, 2  ;;  %v688_v62 = vsel %vm655_vm8, %v634_v55, -inf  ;;  %v637_v4 = vmax.f32 %v2111_v51, 0.0  ;;  %v638_v5 = vmax.f32 %v2115_v58, 0.0 }
 0x12f   :  { %v817_v7 = vmax.f32 %v815_v49, %v816_v59  ;;  %v686_v8 = vrot.slane %v685_v60, 1  ;;  %v820_v9 = vrot.slane %v819_v63, 4  ;;  %v689_v10 = vmax.f32 %v631_v15, %v688_v62  ;;  %v439_v11 = vpop.f32.mrb[24].mxu0  ;;  %v588_v12 = vpop.f32.mrb[24].mxu1 }
 0x130   :  { %v750_v13 = vmax.f32 %v748_v48, %v749_v3  ;;  %v753_v14 = vsel %vm720_vm9, %v635_v1, -inf  ;;  %v579_v16 = vadd.f32 %v578_v31, %v2043_v40  ;;  %v584_v2 = vadd.f32 %v583_v52, %v2043_v40  ;;  %v441_v17 = vpop.f32.mrb[25].mxu0  ;;  %v590_v18 = vpop.f32.mrb[25].mxu1 }
 0x131   :  { %v2124_v19 = vsel %vm862_vm12, %v817_v7, %v898_v42  ;;  %v687_v20 = vmax.f32 %v685_v60, %v686_v8  ;;  %v821_v21 = vmax.f32 %v819_v63, %v820_v9  ;;  %v690_v22 = vrot.slane %v689_v10, 4 }
 0x132   :  { %v751_v56 = vrot.slane %v750_v13, 1  ;;  %v754_v25 = vmax.f32 %v632_v23, %v753_v14  ;;  %v639_v15 = vmax.f32 %v579_v16, 0.0  ;;  %v642_v27 = vmax.f32 %v584_v2, 0.0 }
 0x133   :  { %v2127_v28 = vsel %vm862_vm12, %v687_v20, %v861_v26  ;;  %v822_v29 = vrot.slane %v821_v21, 2  ;;  %v691_v0 = vmax.f32 %v689_v10, %v690_v22  ;;  %v434_v30 = vadd.f32 %v433_v53, %v2041_v39  ;;  %v593_v31 = vpop.f32.mrb[26].mxu1  ;;  %v445_v32 = vpop.f32.mrb[26].mxu0 }
 0x134   :  { %v2130_v33 = vmax.f32 %v750_v13, %v751_v56  ;;  %v755_v34 = vrot.slane %v754_v25, 4  ;;  %v826_v37 = vsel %vm785_vm5, %v642_v27, -inf  ;;  %v436_v24 = vadd.f32 %v435_v46, %v2045_v41  ;;  %v447_v38 = vpop.f32.mrb[27].mxu0  ;;  %v595_v23 = vpop.f32.mrb[27].mxu1 }
 0x135   :  { %v823_v42 = vmax.f32 %v821_v21, %v822_v29  ;;  %v692_v6 = vrot.slane %v691_v0, 2  ;;  %v827_v44 = vmax.f32 %v639_v15, %v826_v37  ;;  %v640_v26 = vmax.f32 %v434_v30, 0.0 }
 0x136   :  { %v756_v36 = vmax.f32 %v754_v25, %v755_v34  ;;  %v641_v45 = vmax.f32 %v436_v24, 0.0  ;;  %v440_v47 = vadd.f32 %v439_v11, %v2041_v39  ;;  %v442_v49 = vadd.f32 %v441_v17, %v2045_v41 }
 0x137   :  { %v824_v50 = vrot.slane %v823_v42, 1  ;;  %v693_v35 = vmax.f32 %v691_v0, %v692_v6  ;;  %v828_v51 = vrot.slane %v827_v44, 4  ;;  %v696_v52 = vsel %vm655_vm8, %v640_v26, -inf  ;;  %v451_v53 = vpop.f32.mrb[28].mxu0  ;;  %v598_v48 = vpop.f32.mrb[28].mxu1 }
 0x138   :  { %v757_v54 = vrot.slane %v756_v36, 2  ;;  %v697_v55 = vmax.f32 %v637_v4, %v696_v52  ;;  %v761_v58 = vsel %vm720_vm9, %v641_v45, -inf  ;;  %v643_v46 = vmax.f32 %v440_v47, 0.0  ;;  %v453_v57 = vpop.f32.mrb[29].mxu0  ;;  %v600_v59 = vpop.f32.mrb[29].mxu1 }
 0x139   :  { %v2138_v60 = vmax.f32 %v823_v42, %v824_v50  ;;  %v694_v63 = vrot.slane %v693_v35, 1  ;;  %v829_v1 = vmax.f32 %v827_v44, %v828_v51  ;;  %v762_v3 = vmax.f32 %v638_v5, %v761_v58 }
 0x13a   :  { %v758_v62 = vmax.f32 %v756_v36, %v757_v54  ;;  %v698_v7 = vrot.slane %v697_v55, 4  ;;  %v644_v8 = vmax.f32 %v442_v49, 0.0  ;;  %v589_v9 = vadd.f32 %v588_v12, %v2043_v40 }
 0x13b   :  { %v2141_v10 = vmax.f32 %v693_v35, %v694_v63  ;;  %v830_v11 = vrot.slane %v829_v1, 2  ;;  %v763_v13 = vrot.slane %v762_v3, 4  ;;  %v594_v4 = vadd.f32 %v593_v31, %v2043_v40  ;;  %v603_v14 = vpop.f32.mrb[30].mxu1  ;;  %v457_v16 = vpop.f32.mrb[30].mxu0 }
 0x13c   :  { %v759_v2 = vrot.slane %v758_v62, 1  ;;  %v699_v17 = vmax.f32 %v697_v55, %v698_v7  ;;  %v645_v18 = vmax.f32 %v589_v9, 0.0  ;;  %v446_v20 = vadd.f32 %v445_v32, %v2041_v39  ;;  %v459_v21 = vpop.f32.mrb[31].mxu0  ;;  %v605_v5 = vpop.f32.mrb[31].mxu1 }
 0x13d   :  { %v831_v22 = vmax.f32 %v829_v1, %v830_v11  ;;  %v764_v56 = vmax.f32 %v762_v3, %v763_v13  ;;  %v648_v25 = vmax.f32 %v594_v4, 0.0  ;;  %v448_v12 = vadd.f32 %v447_v38, %v2045_v41 }
 0x13e   :  { %v760_v15 = vmax.f32 %v758_v62, %v759_v2  ;;  %v700_v27 = vrot.slane %v699_v17, 2  ;;  %v646_v29 = vmax.f32 %v446_v20, 0.0  ;;  %v452_v0 = vadd.f32 %v451_v53, %v2041_v39 }
 0x13f   :  { %v832_v30 = vrot.slane %v831_v22, 1  ;;  %v765_v31 = vrot.slane %v764_v56, 2  ;;  %v834_v34 = vsel %vm785_vm5, %v648_v25, -inf  ;;  %v647_v37 = vmax.f32 %v448_v12, 0.0 }
 0x140   :  { %v701_v32 = vmax.f32 %v699_v17, %v700_v27  ;;  %v835_v24 = vmax.f32 %v645_v18, %v834_v34  ;;  %v704_v23 = vsel %vm655_vm8, %v646_v29, -inf  ;;  %v649_v42 = vmax.f32 %v452_v0, 0.0 }
 0x141   :  { %v833_v6 = vmax.f32 %v831_v22, %v832_v30  ;;  %v766_v44 = vmax.f32 %v764_v56, %v765_v31  ;;  %v705_v26 = vmax.f32 %v643_v46, %v704_v23  ;;  %v769_v38 = vsel %vm720_vm9, %v647_v37, -inf }
 0x142   :  { %v702_v36 = vrot.slane %v701_v32, 1  ;;  %v836_v45 = vrot.slane %v835_v24, 4  ;;  %v770_v47 = vmax.f32 %v644_v8, %v769_v38  ;;  %v454_v49 = vadd.f32 %v453_v57, %v2045_v41 }
 0x143   :  { %v767_v50 = vrot.slane %v766_v44, 1  ;;  %v706_v35 = vrot.slane %v705_v26, 4  ;;  %v599_v51 = vadd.f32 %v598_v48, %v2043_v40  ;;  %v604_v52 = vadd.f32 %v603_v14, %v2043_v40 }
 0x144   :  { %v703_v53 = vmax.f32 %v701_v32, %v702_v36  ;;  %v837_v54 = vmax.f32 %v835_v24, %v836_v45  ;;  %v771_v55 = vrot.slane %v770_v47, 4  ;;  %v650_v58 = vmax.f32 %v454_v49, 0.0 }
 0x145   :  { %v768_v59 = vmax.f32 %v766_v44, %v767_v50  ;;  %v707_v46 = vmax.f32 %v705_v26, %v706_v35  ;;  %v651_v63 = vmax.f32 %v599_v51, 0.0  ;;  %v654_v1 = vmax.f32 %v604_v52, 0.0 }
 0x146   :  { %v838_v3 = vrot.slane %v837_v54, 2  ;;  %v772_v62 = vmax.f32 %v770_v47, %v771_v55  ;;  %v458_v7 = vadd.f32 %v457_v16, %v2041_v39  ;;  %v460_v57 = vadd.f32 %v459_v21, %v2045_v41  ;;  %v1201_v55 = vld [vmem:[%s2186_s4] ss:$0 sm:$0xff] }
 0x147   :  { %v708_v8 = vrot.slane %v707_v46, 2  ;;  %v842_v48 = vsel %vm785_vm5, %v654_v1, -inf  ;;  %v900_v40 = vsel %vm864_vm13, %v2138_v60, %v2124_v19  ;;  %v882_v9 = vsel %vm860_vm11, %v2105_v43, %v2092_v61 }
 0x148   :  { %v839_v11 = vmax.f32 %v837_v54, %v838_v3  ;;  %v773_v13 = vrot.slane %v772_v62, 2  ;;  %v843_v4 = vmax.f32 %v651_v63, %v842_v48  ;;  %v652_v14 = vmax.f32 %v458_v7, 0.0 }
 0x149   :  { %v709_v2 = vmax.f32 %v707_v46, %v708_v8  ;;  %v653_v17 = vmax.f32 %v460_v57, 0.0  ;;  %v901_v39 = vsel %vm866_vm14, %v833_v6, %v900_v40  ;;  %v883_v41 = vsel %vm862_vm12, %v2130_v33, %v882_v9 }
 0x14a   :  { %v840_v16 = vrot.slane %v839_v11, 1  ;;  %v774_v18 = vmax.f32 %v772_v62, %v773_v13  ;;  %v844_v20 = vrot.slane %v843_v4, 4  ;;  %v712_v19 = vsel %vm655_vm8, %v652_v14, -inf }
 0x14b   :  { %v710_v60 = vrot.slane %v709_v2, 1  ;;  %v713_v21 = vmax.f32 %v649_v42, %v712_v19  ;;  %v777_v61 = vsel %vm720_vm9, %v653_v17, -inf  ;;  %v884_v43 = vsel %vm864_vm13, %v760_v15, %v883_v41 }
 0x14c   :  { %v841_v5 = vmax.f32 %v839_v11, %v840_v16  ;;  %v775_v22 = vrot.slane %v774_v18, 1  ;;  %v845_v56 = vmax.f32 %v843_v4, %v844_v20  ;;  %v778_v25 = vmax.f32 %v650_v58, %v777_v61 }
 0x14d   :  { %v711_v12 = vmax.f32 %v709_v2, %v710_v60  ;;  %v714_v27 = vrot.slane %v713_v21, 4  ;;  %v885_v29 = vsel %vm866_vm14, %v768_v59, %v884_v43  ;;  %v865_v33 = vsel %vm864_vm13, %v2141_v10, %v2127_v28 }
 0x14e   :  { %v846_v0 = vrot.slane %v845_v56, 2  ;;  %v779_v30 = vrot.slane %v778_v25, 4  ;;  %v902_v31 = vsel %vm868_vm15, %v841_v5, %v901_v39  ;;  %v776_v34 = vmax.f32 %v774_v18, %v775_v22 }
 0x14f   :  { %v715_v37 = vmax.f32 %v713_v21, %v714_v27  ;;  %v867_v15 = vsel %vm866_vm14, %v703_v53, %v865_v33 }
 0x150   :  { %v847_v32 = vmax.f32 %v845_v56, %v846_v0  ;;  %v780_v24 = vmax.f32 %v778_v25, %v779_v30  ;;  %v886_v23 = vsel %vm868_vm15, %v776_v34, %v885_v29  ;;  %v869_v42 = vsel %vm868_vm15, %v711_v12, %v867_v15 }
 0x151   :  { %v716_v6 = vrot.slane %v715_v37, 2 }
 0x152   :  { %v848_v44 = vrot.slane %v847_v32, 1  ;;  %v781_v26 = vrot.slane %v780_v24, 2 }
 0x153   :  { %v717_v38 = vmax.f32 %v715_v37, %v716_v6 }
 0x154   :  { %v849_v28 = vmax.f32 %v847_v32, %v848_v44  ;;  %v782_v10 = vmax.f32 %v780_v24, %v781_v26 }
 0x155   :  { %v718_v36 = vrot.slane %v717_v38, 1 }
 0x156   :  { %v903_v45 = vsel %vm870_vm1, %v849_v28, %v902_v31  ;;  %v783_v47 = vrot.slane %v782_v10, 1 }
 0x157   :  { %v719_v49 = vmax.f32 %v717_v38, %v718_v36  ;;  %1287 = vmatmul.mubr.f32.vlgmr.msra.gmra.mrb[32].mxu1 %v903_v45 }
 0x158   :  { %v784_v50 = vmax.f32 %v782_v10, %v783_v47 }
 0x159   :  { %v871_v35 = vsel %vm870_vm1, %v719_v49, %v869_v42 }
 0x15a   :  { %v887_v51 = vsel %vm870_vm1, %v784_v50, %v886_v23 }
 0x15b   :  { %1024 = vmatprep.mubr.f32.mxu0 %v887_v51 }
 0x15c   :  { %1025 = vmatmul.mubr.f32.vlgmr.msra.gmra.mrb[32].mxu0 %v871_v35 }
 0x22a   :  { %v1096_v52 = vpop.f32.mrb[32].mxu1 }
 0x22b   :  { %v1288_v53 = vpop.f32.mrb[33].mxu1 }
 0x22f   :  { %v1234_v54 = vpop.f32.mrb[32].mxu0 }
 0x230   :  { %v1235_v58 = vpop.f32.mrb[33].mxu0 }
 0x231   :  { %v1236_v59 = vadd.f32 %v1235_v58, %v1234_v54 }
 0x233   :  { %v1027_v46 = vadd.f32 %v1236_v59, %v1201_v55 }
 0x235   :  { %v1097_v63 = vadd.f32 %v1096_v52, %v1027_v46 }
 0x237   :  { %1100 = vst [vmem:[%s2187_s5] sm:$0xff] %v1097_v63 }

</bundles_post_ra>
